<compile_context>
chip_gen: v7x
topology: tpu7x:2x2x1
jax: 0.10.0
libtpu: 0.0.40
codegen_flags: <defaults>
</compile_context>

<pallas_src>
import jax
import jax.numpy as jnp
from jax.experimental import pallas as pl
from jax.experimental.pallas import tpu as pltpu


def _mlp_kernel(x_ref, w1_ref, b1_ref, w2_ref, b2_ref, wo_ref, bo_ref, out_ref):
    """(Linear -> ReLU) x 2 -> Linear -> log_softmax(dim=1), fully fused.

    Dot operands are bf16 (MXU-native), accumulation and all elementwise /
    transcendental math are f32.
    """
    x = x_ref[...].astype(jnp.bfloat16)                                  # cast in VMEM

    # hidden layer 1: Linear + ReLU   (dropout = identity at inference)
    h = jnp.dot(x, w1_ref[...], preferred_element_type=jnp.float32) + b1_ref[...]
    h = jnp.maximum(h, 0.0).astype(jnp.bfloat16)

    # hidden layer 2: Linear + ReLU
    h = jnp.dot(h, w2_ref[...], preferred_element_type=jnp.float32) + b2_ref[...]
    h = jnp.maximum(h, 0.0).astype(jnp.bfloat16)

    # output layer (true width; no lane padding)
    logits = jnp.dot(h, wo_ref[...], preferred_element_type=jnp.float32) + bo_ref[...]

    # numerically stable log_softmax over the feature axis
    m = jnp.max(logits, axis=1, keepdims=True)
    shifted = logits - m
    lse = jnp.log(jnp.sum(jnp.exp(shifted), axis=1, keepdims=True))
    out_ref[...] = (shifted - lse).astype(out_ref.dtype)


def _num_tensorcores():
    """2 TensorCores per chip on v7x, 1 on v5e/v6e. Best-effort detection."""
    try:
        kind = jax.devices()[0].device_kind.lower()
        if "7" in kind:
            return 2
    except Exception:
        pass
    return 1


# ~1.1 KB of f32 in+out per row (double-buffered) -> 4096-row tiles use <5 MB VMEM.
_MAX_TILE = 4096


def _pick_batch_tile(B, num_tc):
    """Minimize grid steps: 1 step on 1-TC chips, an even >=2 steps on v7x."""
    if B <= 8 or (num_tc <= 1 and B <= _MAX_TILE):
        return B                                   # single grid step
    if num_tc >= 2:
        # prefer the fewest even step count (ideally one tile per TensorCore)
        for steps in (2, 4, 8, 16, 32, 64, 128):
            if B % steps == 0:
                t = B // steps
                if t % 8 == 0 and t <= _MAX_TILE:
                    return t
    # fallback: fewest steps with a multiple-of-8 tile that fits comfortably
    for steps in range(1, B + 1):
        if B % steps == 0:
            t = B // steps
            if t <= _MAX_TILE and (t % 8 == 0 or t == B):
                return t
    return B


def prepare_params(params):
    """One-time prep: bf16 matmul operands, f32 biases. Call once, reuse per step."""
    return {
        "w1": params["w1"].astype(jnp.bfloat16),
        "w2": params["w2"].astype(jnp.bfloat16),
        "wo": params["wo"].astype(jnp.bfloat16),
        "b1": params["b1"].astype(jnp.float32),
        "b2": params["b2"].astype(jnp.float32),
        "bo": params["bo"].astype(jnp.float32),
    }


def network_forward(x, prepared, *, batch_tile=None):
    """Run the fused Network forward pass as a single Pallas TPU kernel.

    x: [B, input_size] float32
    prepared: output of prepare_params() (bf16 weights [in,out], f32 biases [1,out])
    """
    B, in_dim = x.shape
    w1, b1 = prepared["w1"], prepared["b1"]
    w2, b2 = prepared["w2"], prepared["b2"]
    wo, bo = prepared["wo"], prepared["bo"]
    h1, h2 = w1.shape[1], w2.shape[1]
    out_dim = wo.shape[1]

    if batch_tile is None:
        batch_tile = _pick_batch_tile(B, _num_tensorcores())
    assert B % batch_tile == 0, "batch must be divisible by batch_tile"
    assert batch_tile == B or batch_tile % 8 == 0, (
        "batch_tile must be a multiple of 8 (f32 sublane tiling) or equal B")

    grid = (B // batch_tile,)

    def full(shape):
        # weight/bias blocks: same full block every grid step (stay VMEM-resident)
        return pl.BlockSpec(shape, lambda i: (0,) * len(shape))

    # Advisory cost estimate so XLA schedules this tiny kernel sensibly.
    param_bytes = sum(int(a.size) * a.dtype.itemsize
                      for a in (w1, b1, w2, b2, wo, bo))
    cost = pl.CostEstimate(
        flops=2 * B * (in_dim * h1 + h1 * h2 + h2 * out_dim),
        transcendentals=B * (out_dim + 1),               # exp per logit + log per row
        bytes_accessed=B * in_dim * 4 + param_bytes + B * out_dim * 4,
    )

    return pl.pallas_call(
        _mlp_kernel,
        out_shape=jax.ShapeDtypeStruct((B, out_dim), jnp.float32),
        grid=grid,
        in_specs=[
            pl.BlockSpec((batch_tile, in_dim), lambda i: (i, 0)),
            full(w1.shape),
            full(b1.shape),
            full(w2.shape),
            full(b2.shape),
            full(wo.shape),
            full(bo.shape),
        ],
        out_specs=pl.BlockSpec((batch_tile, out_dim), lambda i: (i, 0)),
        compiler_params=pltpu.CompilerParams(
            dimension_semantics=("parallel",),
        ),
        cost_estimate=cost,
    )(x, w1, b1, w2, b2, wo, bo)


def init_params(key, input_size, hidden_layers, output_size):
    """Deterministic parameter init (shapes mirror the PyTorch module, stored [in,out])."""
    sizes = [input_size] + list(hidden_layers)
    keys = jax.random.split(key, len(sizes))
    params = {}
    params["w1"] = (jax.random.normal(keys[0], (sizes[0], sizes[1]), jnp.float32)
                    * (1.0 / jnp.sqrt(sizes[0])))
    params["b1"] = jnp.zeros((1, sizes[1]), jnp.float32) + 0.01
    params["w2"] = (jax.random.normal(keys[1], (sizes[1], sizes[2]), jnp.float32)
                    * (1.0 / jnp.sqrt(sizes[1])))
    params["b2"] = jnp.zeros((1, sizes[2]), jnp.float32) + 0.01
    params["wo"] = (jax.random.normal(keys[-1], (sizes[-1], output_size), jnp.float32)
                    * (1.0 / jnp.sqrt(sizes[-1])))
    params["bo"] = jnp.zeros((1, output_size), jnp.float32) + 0.01
    return params


def reference_forward(x, params):
    """Pure-JAX f32 reference matching the PyTorch forward (eval mode)."""
    h = jnp.maximum(x @ params["w1"] + params["b1"], 0.0)
    h = jnp.maximum(h @ params["w2"] + params["b2"], 0.0)
    logits = h @ params["wo"] + params["bo"]
    return jax.nn.log_softmax(logits, axis=1)


def reference_forward_bf16(x, params):
    """Mirrors the kernel's mixed precision: bf16 dot operands, f32 accumulate."""
    bf = jnp.bfloat16
    h = jnp.dot(x.astype(bf), params["w1"].astype(bf),
                preferred_element_type=jnp.float32) + params["b1"]
    h = jnp.maximum(h, 0.0).astype(bf)
    h = jnp.dot(h, params["w2"].astype(bf),
                preferred_element_type=jnp.float32) + params["b2"]
    h = jnp.maximum(h, 0.0).astype(bf)
    logits = jnp.dot(h, params["wo"].astype(bf),
                     preferred_element_type=jnp.float32) + params["bo"]
    return jax.nn.log_softmax(logits, axis=1)


if __name__ == "__main__":
    # Shapes consistent with the module: Network(input_size=32, output_size=16,
    # hidden_layers=[64, 32], drop_p=0.5), used in eval mode.
    # TODO(synk): dropout is identity here (inference); training-mode dropout
    # would need pltpu.prng_random_bits-based masking inside the kernel.
    input_size, output_size = 32, 16
    hidden_layers = [64, 32]

    key = jax.random.PRNGKey(0)
    k_x1, k_x2, k_p = jax.random.split(key, 3)
    params = init_params(k_p, input_size, hidden_layers, output_size)
    prepared = prepare_params(params)            # one-time: bf16 weights, f32 biases

    fwd = jax.jit(lambda x: network_forward(x, prepared))

    # Case 1: tiny batch (grid of 1), the module's toy usage.
    x_small = jax.random.normal(k_x1, (8, input_size), jnp.float32)
    out_small = jax.block_until_ready(fwd(x_small))
    assert out_small.shape == (8, output_size)
    ref_bf = reference_forward_bf16(x_small, params)
    assert jnp.allclose(out_small, ref_bf, atol=1e-3, rtol=1e-3), "mismatch vs bf16 reference"
    assert jnp.allclose(out_small, reference_forward(x_small, params),
                        atol=1e-1, rtol=1e-1), "mismatch vs f32 reference"

    # Case 2: larger batch; 1 grid step on v5e/v6e (1 TC), 2 steps on v7x (2 TCs).
    x_big = jax.random.normal(k_x2, (256, input_size), jnp.float32)
    out_big = jax.block_until_ready(fwd(x_big))
    assert out_big.shape == (256, output_size)
    ref_big = reference_forward_bf16(x_big, params)
    assert jnp.allclose(out_big, ref_big, atol=1e-3, rtol=1e-3), "mismatch vs bf16 reference (big)"

    print("KERNEL_OK")
</pallas_src>

<mosaic_0001>
module attributes {stable_mosaic.version = 11 : i64} {
  func.func @_mlp_kernel(%arg0: i32, %arg1: memref<8x32xf32, #tpu.memory_space<vmem>>, %arg2: memref<32x64xbf16, #tpu.memory_space<vmem>>, %arg3: memref<1x64xf32, #tpu.memory_space<vmem>>, %arg4: memref<64x32xbf16, #tpu.memory_space<vmem>>, %arg5: memref<1x32xf32, #tpu.memory_space<vmem>>, %arg6: memref<32x16xbf16, #tpu.memory_space<vmem>>, %arg7: memref<1x16xf32, #tpu.memory_space<vmem>>, %arg8: memref<8x16xf32, #tpu.memory_space<vmem>>) attributes {dimension_semantics = [#tpu.dimension_semantics<parallel>], iteration_bounds = array<i64: 1>, scalar_prefetch = 0 : i64, scratch_operands = 0 : i64, tpu.core_type = #tpu.core_type<tc>, window_params = [{transform_indices = @transform_0, window_bounds = array<i64: 8, 32>}, {pipeline_mode = #tpu.pipeline_mode<synchronous>, transform_indices = @transform_1, window_bounds = array<i64: 32, 64>}, {pipeline_mode = #tpu.pipeline_mode<synchronous>, transform_indices = @transform_2, window_bounds = array<i64: 1, 64>}, {pipeline_mode = #tpu.pipeline_mode<synchronous>, transform_indices = @transform_3, window_bounds = array<i64: 64, 32>}, {pipeline_mode = #tpu.pipeline_mode<synchronous>, transform_indices = @transform_4, window_bounds = array<i64: 1, 32>}, {pipeline_mode = #tpu.pipeline_mode<synchronous>, transform_indices = @transform_5, window_bounds = array<i64: 32, 16>}, {pipeline_mode = #tpu.pipeline_mode<synchronous>, transform_indices = @transform_6, window_bounds = array<i64: 1, 16>}, {transform_indices = @transform_7, window_bounds = array<i64: 8, 16>}]} {
    %c0 = arith.constant 0 : index
    %c0_0 = arith.constant 0 : index
    %0 = vector.load %arg1[%c0, %c0_0] : memref<8x32xf32, #tpu.memory_space<vmem>>, vector<8x32xf32>
    %1 = arith.truncf %0 : vector<8x32xf32> to vector<8x32xbf16>
    %c0_1 = arith.constant 0 : index
    %c0_2 = arith.constant 0 : index
    %2 = vector.load %arg2[%c0_1, %c0_2] : memref<32x64xbf16, #tpu.memory_space<vmem>>, vector<32x64xbf16>
    %cst = arith.constant dense<0.000000e+00> : vector<8x64xf32>
    %3 = tpu.matmul %1, %2, %cst {dimension_numbers = #tpu.dot_dimension_numbers<[1], [0], [0], [1], [0, 0, 1, 1], [], []>} : vector<8x32xbf16>, vector<32x64xbf16>, vector<8x64xf32> -> vector<8x64xf32>
    %c0_3 = arith.constant 0 : index
    %c0_4 = arith.constant 0 : index
    %4 = vector.load %arg3[%c0_3, %c0_4] : memref<1x64xf32, #tpu.memory_space<vmem>>, vector<1x64xf32>
    %5 = vector.broadcast %4 : vector<1x64xf32> to vector<8x64xf32>
    %6 = arith.addf %3, %5 : vector<8x64xf32>
    %cst_5 = arith.constant 0.000000e+00 : f32
    %7 = vector.broadcast %cst_5 : f32 to vector<8x64xf32>
    %8 = arith.maximumf %6, %7 : vector<8x64xf32>
    %9 = arith.truncf %8 : vector<8x64xf32> to vector<8x64xbf16>
    %c0_6 = arith.constant 0 : index
    %c0_7 = arith.constant 0 : index
    %10 = vector.load %arg4[%c0_6, %c0_7] : memref<64x32xbf16, #tpu.memory_space<vmem>>, vector<64x32xbf16>
    %cst_8 = arith.constant dense<0.000000e+00> : vector<8x32xf32>
    %11 = tpu.matmul %9, %10, %cst_8 {dimension_numbers = #tpu.dot_dimension_numbers<[1], [0], [0], [1], [0, 0, 1, 1], [], []>} : vector<8x64xbf16>, vector<64x32xbf16>, vector<8x32xf32> -> vector<8x32xf32>
    %c0_9 = arith.constant 0 : index
    %c0_10 = arith.constant 0 : index
    %12 = vector.load %arg5[%c0_9, %c0_10] : memref<1x32xf32, #tpu.memory_space<vmem>>, vector<1x32xf32>
    %13 = vector.broadcast %12 : vector<1x32xf32> to vector<8x32xf32>
    %14 = arith.addf %11, %13 : vector<8x32xf32>
    %cst_11 = arith.constant 0.000000e+00 : f32
    %15 = vector.broadcast %cst_11 : f32 to vector<8x32xf32>
    %16 = arith.maximumf %14, %15 : vector<8x32xf32>
    %17 = arith.truncf %16 : vector<8x32xf32> to vector<8x32xbf16>
    %c0_12 = arith.constant 0 : index
    %c0_13 = arith.constant 0 : index
    %18 = vector.load %arg6[%c0_12, %c0_13] : memref<32x16xbf16, #tpu.memory_space<vmem>>, vector<32x16xbf16>
    %cst_14 = arith.constant dense<0.000000e+00> : vector<8x16xf32>
    %19 = tpu.matmul %17, %18, %cst_14 {dimension_numbers = #tpu.dot_dimension_numbers<[1], [0], [0], [1], [0, 0, 1, 1], [], []>} : vector<8x32xbf16>, vector<32x16xbf16>, vector<8x16xf32> -> vector<8x16xf32>
    %c0_15 = arith.constant 0 : index
    %c0_16 = arith.constant 0 : index
    %20 = vector.load %arg7[%c0_15, %c0_16] : memref<1x16xf32, #tpu.memory_space<vmem>>, vector<1x16xf32>
    %21 = vector.broadcast %20 : vector<1x16xf32> to vector<8x16xf32>
    %22 = arith.addf %19, %21 : vector<8x16xf32>
    %cst_17 = arith.constant dense<0xFF800000> : vector<8xf32>
    %23 = vector.multi_reduction <maximumf>, %22, %cst_17 [1] : vector<8x16xf32> to vector<8xf32>
    %24 = vector.shape_cast %23 : vector<8xf32> to vector<8x1xf32>
    %25 = vector.broadcast %24 : vector<8x1xf32> to vector<8x16xf32>
    %26 = arith.subf %22, %25 : vector<8x16xf32>
    %27 = math.exp %26 : vector<8x16xf32>
    %cst_18 = arith.constant dense<0.000000e+00> : vector<8xf32>
    %28 = vector.multi_reduction <add>, %27, %cst_18 [1] : vector<8x16xf32> to vector<8xf32>
    %29 = vector.shape_cast %28 : vector<8xf32> to vector<8x1xf32>
    %30 = math.log %29 : vector<8x1xf32>
    %31 = vector.broadcast %30 : vector<8x1xf32> to vector<8x16xf32>
    %32 = arith.subf %26, %31 : vector<8x16xf32>
    %c0_19 = arith.constant 0 : index
    %c0_20 = arith.constant 0 : index
    %33 = vector.load %arg8[%c0_19, %c0_20] : memref<8x16xf32, #tpu.memory_space<vmem>>, vector<8x16xf32>
    tpu.vector_store %arg8[%c0_19, %c0_20], %32 {strides = array<i32>} : memref<8x16xf32, #tpu.memory_space<vmem>>, vector<8x16xf32>,
    return
  }
  func.func @transform_0(%arg0: i32) -> (i32, i32) {
    %c0_i32 = arith.constant 0 : i32
    %c0_i32_0 = arith.constant 0 : i32
    return %arg0, %c0_i32 : i32, i32
  }
  func.func @transform_1(%arg0: i32) -> (i32, i32) {
    %c0_i32 = arith.constant 0 : i32
    %c0_i32_0 = arith.constant 0 : i32
    %c0_i32_1 = arith.constant 0 : i32
    return %c0_i32, %c0_i32_0 : i32, i32
  }
  func.func @transform_2(%arg0: i32) -> (i32, i32) {
    %c0_i32 = arith.constant 0 : i32
    %c0_i32_0 = arith.constant 0 : i32
    %c0_i32_1 = arith.constant 0 : i32
    return %c0_i32, %c0_i32_0 : i32, i32
  }
  func.func @transform_3(%arg0: i32) -> (i32, i32) {
    %c0_i32 = arith.constant 0 : i32
    %c0_i32_0 = arith.constant 0 : i32
    %c0_i32_1 = arith.constant 0 : i32
    return %c0_i32, %c0_i32_0 : i32, i32
  }
  func.func @transform_4(%arg0: i32) -> (i32, i32) {
    %c0_i32 = arith.constant 0 : i32
    %c0_i32_0 = arith.constant 0 : i32
    %c0_i32_1 = arith.constant 0 : i32
    return %c0_i32, %c0_i32_0 : i32, i32
  }
  func.func @transform_5(%arg0: i32) -> (i32, i32) {
    %c0_i32 = arith.constant 0 : i32
    %c0_i32_0 = arith.constant 0 : i32
    %c0_i32_1 = arith.constant 0 : i32
    return %c0_i32, %c0_i32_0 : i32, i32
  }
  func.func @transform_6(%arg0: i32) -> (i32, i32) {
    %c0_i32 = arith.constant 0 : i32
    %c0_i32_0 = arith.constant 0 : i32
    %c0_i32_1 = arith.constant 0 : i32
    return %c0_i32, %c0_i32_0 : i32, i32
  }
  func.func @transform_7(%arg0: i32) -> (i32, i32) {
    %c0_i32 = arith.constant 0 : i32
    %c0_i32_0 = arith.constant 0 : i32
    return %arg0, %c0_i32 : i32, i32
  }
}

</mosaic_0001>

<bundles_post_ra>
// kernel: _lambda_.1
= control target key start
LH: loop header
LB: loop body
LE: loop exit
PB: predicated region body
PF: predicated region fallthrough
CT: control target
= control target key end

     0   :  { %12 = vsyncpa [#allocation3], 0  ;;  %s617_s0 = inlined_call_operand.hbm [shape: f32[8,32], index: 0, kind: input, shape index: {}]   ;;  %s618_s1 = inlined_call_operand.hbm [shape: bf16[32,64], index: 1, kind: input, shape index: {}]   ;;  %s619_s2 = inlined_call_operand.vmem [shape: f32[1,64], index: 2, kind: input, shape index: {}]   ;;  %s620_s3 = inlined_call_operand.vmem [shape: bf16[64,32], index: 3, kind: input, shape index: {}]   ;;  %s621_s4 = inlined_call_operand.vmem [shape: f32[1,32], index: 4, kind: input, shape index: {}]   ;;  %s622_s5 = inlined_call_operand.hbm [shape: bf16[32,16], index: 5, kind: input, shape index: {}]   ;;  %s623_s6 = inlined_call_operand.vmem [shape: f32[1,16], index: 6, kind: input, shape index: {}]   ;;  %s624_s7 = inlined_call_operand.hbm [shape: f32[8,16], index: 7, kind: output, shape index: {}]  }
   0x1   :  { %13 = vsyncpa [#allocation6], 0 }
   0x2   :  { %14 = vsyncpa [#allocation4], 0  ;;  %s486_s24 = smov [#allocation5]   ;;  %s392_s28 = scalar_lea.hbm %s618_s1, 256 }
   0x3   :  { %s30_s25 = sshll.u32 %s486_s24, 4  ;;  %p393_p0 = scmp.ne.s32.totalorder %s618_s1, %s392_s28  ;;  %s31_s25 = int_to_ptr.vmem [resolvable:$true] %s30_s25 }
   0x4   :  { %p396_p1 = scmp.lt.u32.totalorder %s392_s28, %s618_s1 }
   0x6   :  { %p398_p2 = pnand %p396_p1, %p393_p0 }
   0x8   :  { %401 = shalt.err (!%p398_p2)
}
   0x9   :  { %s402_s10 = scalar_lea.vmem %s31_s25, 256  ;;  %p407_p4 = scmp.lt.s32.totalorder %s31_s25, %s31_s25 }
   0xa   :  { %p403_p3 = scmp.ne.s32.totalorder %s31_s25, %s402_s10  ;;  %p408_p5 = scmp.lt.s32.totalorder %s402_s10, %s402_s10 }
   0xc   :  { %p409_p6 = por %p408_p5, %p407_p4 }
   0xe   :  { %p410_p7 = pnand %p409_p6, %p403_p3 }
  0x10   :  { %413 = shalt.err (!%p410_p7)
}
  0x11   :  { %s487_s11 = smov 64   ;;  %s488_s12 = smov 4  }
  0x12   :  { %36 = dma.hbm_to_vmem [thread:$0]  %s618_s1, 256, %s31_s25, [#allocation6], %s487_s11, %s487_s11, %s488_s12  }
  0x13   :  { %s489_s15 = smov [#allocation2]   ;;  %s490_s17 = smov [#allocation7]  }
  0x14   :  { %s21_s16 = sshll.u32 %s489_s15, 4  ;;  %s48_s18 = sshll.u32 %s490_s17, 4  ;;  %s22_s16 = int_to_ptr.vmem [resolvable:$true] %s21_s16  ;;  %s49_s18 = int_to_ptr.vmem [resolvable:$true] %s48_s18 }
  0x15   :  { %s414_s21 = scalar_lea.hbm %s617_s0, 128 }
  0x16   :  { %p415_p8 = scmp.ne.s32.totalorder %s617_s0, %s414_s21  ;;  %p418_p9 = scmp.lt.u32.totalorder %s414_s21, %s617_s0 }
  0x18   :  { %p420_p10 = pnand %p418_p9, %p415_p8 }
  0x1a   :  { %423 = shalt.err (!%p420_p10)
}
  0x1b   :  { %s424_s1 = scalar_lea.vmem %s22_s16, 128  ;;  %p429_p12 = scmp.lt.s32.totalorder %s22_s16, %s22_s16 }
  0x1c   :  { %p425_p11 = scmp.ne.s32.totalorder %s22_s16, %s424_s1  ;;  %p430_p13 = scmp.lt.s32.totalorder %s424_s1, %s424_s1 }
  0x1e   :  { %p431_p0 = por %p430_p13, %p429_p12 }
  0x20   :  { %p432_p1 = pnand %p431_p0, %p425_p11 }
  0x22   :  { %435 = shalt.err (!%p432_p1)
}
  0x23   :  { %24 = dma.hbm_to_vmem [thread:$0]  %s617_s0, 128, %s22_s16, [#allocation3]  }
  0x24   :  { %s436_s30 = scalar_lea.hbm %s622_s5, 256 }
  0x25   :  { %p437_p2 = scmp.ne.s32.totalorder %s622_s5, %s436_s30  ;;  %p440_p3 = scmp.lt.u32.totalorder %s436_s30, %s622_s5 }
  0x27   :  { %p442_p4 = pnand %p440_p3, %p437_p2 }
  0x29   :  { %445 = shalt.err (!%p442_p4)
}
  0x2a   :  { %s446_s14 = scalar_lea.vmem %s49_s18, 256  ;;  %p451_p6 = scmp.lt.s32.totalorder %s49_s18, %s49_s18 }
  0x2b   :  { %p447_p5 = scmp.ne.s32.totalorder %s49_s18, %s446_s14  ;;  %p452_p7 = scmp.lt.s32.totalorder %s446_s14, %s446_s14 }
  0x2d   :  { %p453_p8 = por %p452_p7, %p451_p6 }
  0x2f   :  { %p454_p9 = pnand %p453_p8, %p447_p5 }
  0x31   :  { %457 = shalt.err (!%p454_p9)
}
  0x32   :  { %54 = dma.hbm_to_vmem [thread:$0]  %s622_s5, 256, %s49_s18, [#allocation6], %s487_s11, %s487_s11, %s488_s12  }
  0x33   :  { %480 = dma.done.wait [#allocation3], 128  }
  0x34   :  { %481 = vsyncadd [#allocation3], 4294967168 }
  0x35   :  { %482 = dma.done.wait [#allocation6], 512  }
  0x36   :  { %483 = vsyncadd [#allocation6], 4294966784  ;;  %v491_v0 = vmov 0.0   ;;  %vm492_vm0 = vmmov 0   ;;  %v380_v1 = vld [vmem:[#allocation5] sm:$0xff]   ;;  %v381_v2 = vld [vmem:[#allocation5 + $0x8] sm:$0xff]  }
  0x37   :  { %344 = vmatprep.subr.bf16.mxu0 %v491_v0  ;;  %348 = vmatprep.mubr.msk.bf16.mxu0 %vm492_vm0, %v491_v0  ;;  %v67_v3 = vld [vmem:[#allocation2] sm:$0xff]  ;;  %vm92_vm1 = vcmask 261120   ;;  %v383_v5 = vld [vmem:[%s620_s3 + $0x8] sm:$0xff]   ;;  %v384_v7 = vld [vmem:[%s620_s3 + $0x10] sm:$0xff]   ;;  %vm177_vm2 = vcmask 523264   ;;  %vm289_vm3 = vcmask 130048  }
  0x38   :  { %352 = vmatprep.subr.bf16.mxu1 %v491_v0  ;;  %360 = vmatprep.mubr.msk.bf16.mxu1 %vm492_vm0, %v491_v0  ;;  %v382_v4 = vld [vmem:[%s620_s3] sm:$0xff]   ;;  %v68_v6 = vpack.c.bf16 %v67_v3, %v67_v3  ;;  %v385_v8 = vld [vmem:[%s620_s3 + $0x18] sm:$0xff]  }
  0x39   :  { %345 = vmatpush3.bf16.msra.mxu0 %v380_v1  ;;  %353 = vmatpush3.bf16.msra.mxu1 %v382_v4  ;;  %v386_v9 = vld [vmem:[#allocation7] sm:$0xff]   ;;  %v319_v10 = vld [vmem:[%s619_s2] ss:$0 sm:$0xff] }
  0x3a   :  { %346 = vmatprep.subr.bf16.mxu0 %v491_v0  ;;  %354 = vmatprep.subr.bf16.mxu1 %v491_v0  ;;  %v387_v18 = vld [vmem:[#allocation7 + $0x8] sm:$0xff]  }
  0x3b   :  { %v323_v19 = vld [vmem:[%s621_s4] ss:$0 sm:$0xff]  ;;  %s493_s4 = smov [#allocation8]  }
  0x3c   :  { %v329_v27 = vld [vmem:[%s623_s6] ss:$0 sm:$0xff]  ;;  %s309_s6 = sshll.u32 %s493_s4, 4  ;;  %s310_s6 = int_to_ptr.vmem [resolvable:$true] %s309_s6 }
  0x3d   :  { %347 = vmatpush3.bf16.msra.mxu0 %v381_v2  ;;  %355 = vmatpush3.bf16.msra.mxu1 %v383_v5  ;;  %s458_s26 = scalar_lea.vmem %s310_s6, 128  ;;  %p463_p11 = scmp.lt.s32.totalorder %s310_s6, %s310_s6 }
  0x3e   :  { %364 = vmatprep.subr.bf16.mxu0 %v491_v0  ;;  %356 = vmatprep.subr.bf16.mxu1 %v491_v0  ;;  %p459_p10 = scmp.ne.s32.totalorder %s310_s6, %s458_s26  ;;  %p464_p12 = scmp.lt.s32.totalorder %s458_s26, %s458_s26 }
  0x40   :  { %349 = vmatmul.mubr.msk.bf16.vlgmr.msra.gmra.mrb[0].mxu0 %vm92_vm1, %v68_v6  ;;  %p465_p13 = por %p464_p12, %p463_p11 }
  0x41   :  { %368 = vmatprep.mubr.msk.bf16.mxu0 %vm492_vm0, %v491_v0  ;;  %357 = vmatpush3.bf16.msra.mxu1 %v384_v7 }
  0x42   :  { %358 = vmatprep.subr.bf16.mxu1 %v491_v0  ;;  %365 = vmatpush3.bf16.msra.mxu0 %v386_v9  ;;  %p466_p0 = pnand %p465_p13, %p459_p10 }
  0x43   :  { %366 = vmatprep.subr.bf16.mxu0 %v491_v0 }
  0x45   :  { %359 = vmatpush3.bf16.msra.mxu1 %v385_v8 }
  0x46   :  { %367 = vmatpush3.bf16.msra.mxu0 %v387_v18 }
 0x113   :  { %v130_v11 = vpop.f32.mrb[0].mxu0 }
 0x114   :  { %v131_v12 = vadd.f32 %v319_v10, %v130_v11  ;;  %v350_v13 = vpop.f32.mrb[1].mxu0 }
 0x115   :  { %v133_v14 = vpop.f32.mrb[2].mxu0 }
 0x116   :  { %v136_v15 = vmax.f32 %v131_v12, 0.0  ;;  %v351_v16 = vpop.f32.mrb[3].mxu0 }
 0x118   :  { %v137_v17 = vpack.c.bf16 %v136_v15, %v136_v15 }
 0x11a   :  { %361 = vmatmul.mubr.msk.bf16.vlgmr.msra.gmra.mrb[0].mxu1 %vm177_vm2, %v137_v17 }
 0x1ed   :  { %v215_v20 = vpop.f32.mrb[0].mxu1 }
 0x1ee   :  { %v216_v21 = vadd.f32 %v323_v19, %v215_v20  ;;  %v362_v22 = vpop.f32.mrb[1].mxu1 }
 0x1ef   :  { %v218_v23 = vpop.f32.mrb[2].mxu1 }
 0x1f0   :  { %v221_v24 = vmax.f32 %v216_v21, 0.0  ;;  %v363_v25 = vpop.f32.mrb[3].mxu1 }
 0x1f2   :  { %v222_v26 = vpack.c.bf16 %v221_v24, %v221_v24 }
 0x1f4   :  { %369 = vmatmul.mubr.msk.bf16.vlgmr.msra.gmra.mrb[4].mxu0 %vm92_vm1, %v222_v26 }
 0x2c7   :  { %v283_v28 = vpop.f32.mrb[4].mxu0 }
 0x2c8   :  { %v284_v29 = vadd.f32 %v329_v27, %v283_v28  ;;  %v370_v30 = vpop.f32.mrb[5].mxu0 }
 0x2c9   :  { %v286_v31 = vpop.f32.mrb[6].mxu0 }
 0x2ca   :  { %v371_v32 = vpop.f32.mrb[7].mxu0  ;;  %v290_v33 = vsel %vm289_vm3, %v284_v29, -inf }
 0x2cb   :  { %291 = vmax.xlane.f32.xlu0 %v290_v33 }
 0x358   :  { %v292_v34 = vpop.xlane.xlu0 %291 }
 0x359   :  { %v293_v35 = vsub.f32 %v284_v29, %v292_v34 }
 0x35b   :  { %v294_v36 = vmul.f32 1.442695, %v293_v35 }
 0x35d   :  { %388 = vpow2.f32 %v294_v36 }
 0x367   :  { %v389_v37 = vpop.eup %388 }
 0x368   :  { %v296_v38 = vsel %vm289_vm3, %v389_v37, 0.0 }
 0x369   :  { %297 = vadd.xlane.f32.xlu0 %v296_v38 }
 0x3f6   :  { %v298_v39 = vpop.xlane.xlu0 %297 }
 0x3f7   :  { %390 = vlog2.f32 %v298_v39 }
 0x401   :  { %v391_v40 = vpop.eup %390 }
 0x402   :  { %v300_v41 = vmul.f32 0.6931472, %v391_v40 }
 0x404   :  { %v301_v42 = vsub.f32 %v293_v35, %v300_v41 }
 0x406   :  { %302 = vst.msk [vmem:[#allocation8] sm:$0xff] %vm289_vm3, %v301_v42 }
 0x407   :  { %469 = shalt.err (!%p466_p0)
}
 0x408   :  { %s470_s27 = scalar_lea.hbm %s624_s7, 128 }
 0x409   :  { %p471_p1 = scmp.ne.s32.totalorder %s624_s7, %s470_s27  ;;  %p474_p2 = scmp.lt.u32.totalorder %s470_s27, %s624_s7 }
 0x40b   :  { %p476_p3 = pnand %p474_p2, %p471_p1 }
 0x40d   :  { %479 = shalt.err (!%p476_p3)
}
 0x40e   :  { %312 = dma.vmem_to_hbm [thread:$0]  %s310_s6, 128, %s624_s7, [#allocation4]  }
 0x40f   :  { %484 = dma.done.wait [#allocation4], 128  }
 0x410   :  { %485 = vsyncadd [#allocation4], 4294967168 }
 0x411   :  { %316 = vsyncpa [#allocation3], 1 }
 0x412   :  { %317 = vsyncpa [#allocation6], 1 }
 0x413   :  { %318 = vsyncpa [#allocation4], 1 }

</bundles_post_ra>
